<compile_context>
chip_gen: v5e
topology: v5e:2x2
jax: 0.10.0
libtpu: 0.0.40
codegen_flags: <defaults>
</compile_context>

<pallas_src>
import math
import numpy as np
import jax
import jax.numpy as jnp
from jax import lax
from jax.experimental import pallas as pl
from jax.experimental.pallas import tpu as pltpu

WINDOW_SIZE = 11
SIGMA = 1.5
C1 = 0.01 ** 2
C2 = 0.03 ** 2


def _gaussian_1d(window_size=WINDOW_SIZE, sigma=SIGMA):
    """Deterministic re-implementation of MSSIM.gaussian (float32, normalized)."""
    g = np.array(
        [math.exp(-(x - window_size // 2) ** 2 / float(2 * sigma ** 2))
         for x in range(window_size)],
        dtype=np.float32,
    )
    return g / g.sum()


def _round_up(x, m):
    return ((x + m - 1) // m) * m


def _make_mssim_kernel(H, out_w, need_mask, valid_cols_last):
    """Build the per-group kernel with static shape / mask params baked in."""

    def kernel(a_mat_ref, b_mat_ref, x_ref, y_ref, out_ref):
        A = a_mat_ref[...]      # (H, Hp_pad)        banded H-pass matrix
        Bm = b_mat_ref[...]     # (Wc_pad, GB*W)     block-diagonal W-pass matrix
        a = x_ref[...]          # (Hp_pad, Wc_pad)   packed, zero-padded img1 group
        b = y_ref[...]          # (Hp_pad, Wc_pad)   packed, zero-padded img2 group

        def gconv(z):
            # Separable Gaussian filter as two MXU matmuls: (A @ z) @ B.
            t = jnp.dot(A, z, preferred_element_type=jnp.float32)
            return jnp.dot(t, Bm, preferred_element_type=jnp.float32)

        mu1 = gconv(a)
        mu2 = gconv(b)
        s11 = gconv(a * a)      # aa/bb/ab formed per tile, never full-size
        s22 = gconv(b * b)
        s12 = gconv(a * b)

        mu1_sq = mu1 * mu1
        mu2_sq = mu2 * mu2
        mu1_mu2 = mu1 * mu2
        sigma1_sq = s11 - mu1_sq
        sigma2_sq = s22 - mu2_sq
        sigma12 = s12 - mu1_mu2

        num = (2.0 * mu1_mu2 + C1) * (2.0 * sigma12 + C2)
        den = (mu1_sq + mu2_sq + C1) * (sigma1_sq + sigma2_sq + C2)
        # Exact reciprocal keeps the divide off the VALU (EUP slot).
        ssim_map = num * pl.reciprocal(den, approx=False)

        if need_mask:
            # Only the last group can be partially populated with dummy
            # (all-zero) images; mask their columns out of the partial sum.
            i = pl.program_id(0)
            valid = jnp.where(i == pl.num_programs(0) - 1,
                              valid_cols_last, out_w)
            col = lax.broadcasted_iota(jnp.int32, (H, out_w), 1)
            ssim_map = jnp.where(col < valid, ssim_map, 0.0)

        # Lane-dense partial-sum block (unmasked full-width store).
        out_ref[...] = jnp.full((8, 128), jnp.sum(ssim_map), dtype=jnp.float32)

    return kernel


def mssim_pallas(img1, img2, window_size=WINDOW_SIZE):
    """Pallas equivalent of MSSIM(window_size, channel, size_average=True)(img1, img2)."""
    assert img1.shape == img2.shape
    N, C, H, W = img1.shape
    K = window_size
    pad = K // 2
    G = N * C
    Hp = H + K - 1
    Wp = W + K - 1

    # Pack GB images along the lane (width) axis per grid step; ~128/W images
    # keeps the SSIM-map width near one full vreg of lanes.
    GB = min(G, max(1, 128 // W))
    num_groups = -(-G // GB)        # ceil
    G_padded = num_groups * GB
    valid_last = G - (num_groups - 1) * GB      # images in the last group
    need_mask = valid_last != GB

    Hp_pad = _round_up(Hp, 8)        # sublane-aligned padded height
    Wc = GB * Wp                     # packed group width before lane rounding
    Wc_pad = _round_up(Wc, 128)      # lane-aligned packed width
    out_w = GB * W                   # SSIM-map width per group

    g = _gaussian_1d(K)
    # Banded matrices implementing the two separable 1-D Gaussian passes.
    #   (A @ x_pad @ B)[i, g*W + j] = sum_{ky,kx} g[ky] g[kx] x_pad[i+ky, g*Wp + j+kx]
    A = np.zeros((H, Hp_pad), dtype=np.float32)
    rows_h = np.arange(H)
    for k in range(K):
        A[rows_h, rows_h + k] = g[k]
    # Block-diagonal W-pass matrix: one (Wp -> W) band per packed image slot.
    B = np.zeros((Wc_pad, out_w), dtype=np.float32)
    rows_w = np.arange(W)
    for s in range(GB):
        for k in range(K):
            B[s * Wp + rows_w + k, s * W + rows_w] = g[k]
    A = jnp.asarray(A)
    B = jnp.asarray(B)

    x = img1.astype(jnp.float32).reshape(G, H, W)
    y = img2.astype(jnp.float32).reshape(G, H, W)

    def pack(z):
        # (G, H, W) -> (num_groups, Hp_pad, Wc_pad) with per-image zero halos.
        if G_padded > G:
            z = jnp.pad(z, ((0, G_padded - G), (0, 0), (0, 0)))
        z = jnp.pad(z, ((0, 0), (pad, Hp_pad - H - pad), (pad, pad)))
        z = z.reshape(num_groups, GB, Hp_pad, Wp)
        z = jnp.transpose(z, (0, 2, 1, 3)).reshape(num_groups, Hp_pad, GB * Wp)
        return jnp.pad(z, ((0, 0), (0, 0), (0, Wc_pad - Wc)))

    xp = pack(x)
    yp = pack(y)

    kernel = _make_mssim_kernel(H, out_w, need_mask, valid_last * W)

    partial = pl.pallas_call(
        kernel,
        out_shape=jax.ShapeDtypeStruct((num_groups, 8, 128), jnp.float32),
        grid=(num_groups,),
        in_specs=[
            pl.BlockSpec((H, Hp_pad), lambda i: (0, 0)),                 # A
            pl.BlockSpec((Wc_pad, out_w), lambda i: (0, 0)),             # B
            pl.BlockSpec((None, Hp_pad, Wc_pad), lambda i: (i, 0, 0)),   # img1 group
            pl.BlockSpec((None, Hp_pad, Wc_pad), lambda i: (i, 0, 0)),   # img2 group
        ],
        out_specs=pl.BlockSpec((None, 8, 128), lambda i: (i, 0, 0)),
        compiler_params=pltpu.CompilerParams(
            dimension_semantics=("parallel",),   # megacore: groups split across TCs
        ),
    )(A, B, xp, yp)

    # size_average=True -> single scalar mean over all N*C*H*W elements.
    total = jnp.sum(partial[:, 0, 0])
    return total / (N * C * H * W)


def _mssim_reference_np(img1, img2, window_size=WINDOW_SIZE):
    """Pure-numpy (float64) reference mirroring the PyTorch module."""
    x = np.asarray(img1, dtype=np.float64)
    y = np.asarray(img2, dtype=np.float64)
    N, C, H, W = x.shape
    K = window_size
    pad = K // 2
    g = _gaussian_1d(K).astype(np.float64)
    w2d = np.outer(g, g)

    def conv(z):
        zp = np.pad(z, ((0, 0), (0, 0), (pad, pad), (pad, pad)))
        out = np.zeros_like(z)
        for ky in range(K):
            for kx in range(K):
                out += w2d[ky, kx] * zp[:, :, ky:ky + H, kx:kx + W]
        return out

    mu1 = conv(x)
    mu2 = conv(y)
    mu1_sq = mu1 ** 2
    mu2_sq = mu2 ** 2
    mu1_mu2 = mu1 * mu2
    sigma1_sq = conv(x * x) - mu1_sq
    sigma2_sq = conv(y * y) - mu2_sq
    sigma12 = conv(x * y) - mu1_mu2
    ssim_map = ((2 * mu1_mu2 + C1) * (2 * sigma12 + C2)) / (
        (mu1_sq + mu2_sq + C1) * (sigma1_sq + sigma2_sq + C2))
    return float(ssim_map.mean())


if __name__ == "__main__":
    key = jax.random.PRNGKey(0)
    k1, k2 = jax.random.split(key)
    N, C, H, W = 2, 4, 16, 16
    img1 = jax.random.uniform(k1, (N, C, H, W), dtype=jnp.float32)
    img2 = jax.random.uniform(k2, (N, C, H, W), dtype=jnp.float32)

    out = jax.block_until_ready(mssim_pallas(img1, img2))

    ref = _mssim_reference_np(np.asarray(img1), np.asarray(img2))
    assert np.allclose(np.asarray(out), ref, rtol=1e-4, atol=1e-4), (
        f"mismatch: pallas={float(out)} ref={ref}")

    # Also exercise a group count that does not divide evenly (mask path).
    N2, C2 = 1, 3
    j1 = jax.random.uniform(k1, (N2, C2, H, W), dtype=jnp.float32)
    j2 = jax.random.uniform(k2, (N2, C2, H, W), dtype=jnp.float32)
    out2 = jax.block_until_ready(mssim_pallas(j1, j2))
    ref2 = _mssim_reference_np(np.asarray(j1), np.asarray(j2))
    assert np.allclose(np.asarray(out2), ref2, rtol=1e-4, atol=1e-4), (
        f"mismatch(mask path): pallas={float(out2)} ref={ref2}")

    print("KERNEL_OK")
</pallas_src>

<mosaic_0001>
module attributes {stable_mosaic.version = 11 : i64} {
  func.func @kernel(%arg0: i32, %arg1: memref<16x32xf32, #tpu.memory_space<vmem>>, %arg2: memref<256x128xf32, #tpu.memory_space<vmem>>, %arg3: memref<1x32x256xf32, #tpu.memory_space<vmem>>, %arg4: memref<1x32x256xf32, #tpu.memory_space<vmem>>, %arg5: memref<1x8x128xf32, #tpu.memory_space<vmem>>) attributes {dimension_semantics = [#tpu.dimension_semantics<parallel>], iteration_bounds = array<i64: 1>, scalar_prefetch = 0 : i64, scratch_operands = 0 : i64, tpu.core_type = #tpu.core_type<tc>, window_params = [{pipeline_mode = #tpu.pipeline_mode<synchronous>, transform_indices = @transform_0, window_bounds = array<i64: 16, 32>}, {pipeline_mode = #tpu.pipeline_mode<synchronous>, transform_indices = @transform_1, window_bounds = array<i64: 256, 128>}, {transform_indices = @transform_2, window_bounds = array<i64: 1, 32, 256>}, {transform_indices = @transform_3, window_bounds = array<i64: 1, 32, 256>}, {transform_indices = @transform_4, window_bounds = array<i64: 1, 8, 128>}]} {
    %c0 = arith.constant 0 : index
    %c0_0 = arith.constant 0 : index
    %0 = vector.load %arg1[%c0, %c0_0] : memref<16x32xf32, #tpu.memory_space<vmem>>, vector<16x32xf32>
    %c0_1 = arith.constant 0 : index
    %c0_2 = arith.constant 0 : index
    %1 = vector.load %arg2[%c0_1, %c0_2] : memref<256x128xf32, #tpu.memory_space<vmem>>, vector<256x128xf32>
    %c0_3 = arith.constant 0 : index
    %c0_4 = arith.constant 0 : index
    %c0_5 = arith.constant 0 : index
    %2 = vector.load %arg3[%c0_3, %c0_4, %c0_5] : memref<1x32x256xf32, #tpu.memory_space<vmem>>, vector<1x32x256xf32>
    %3 = vector.shape_cast %2 : vector<1x32x256xf32> to vector<32x256xf32>
    %c0_6 = arith.constant 0 : index
    %c0_7 = arith.constant 0 : index
    %c0_8 = arith.constant 0 : index
    %4 = vector.load %arg4[%c0_6, %c0_7, %c0_8] : memref<1x32x256xf32, #tpu.memory_space<vmem>>, vector<1x32x256xf32>
    %5 = vector.shape_cast %4 : vector<1x32x256xf32> to vector<32x256xf32>
    %cst = arith.constant dense<0.000000e+00> : vector<16x256xf32>
    %6 = tpu.matmul %0, %3, %cst {dimension_numbers = #tpu.dot_dimension_numbers<[1], [0], [0], [1], [0, 0, 1, 1], [], []>} : vector<16x32xf32>, vector<32x256xf32>, vector<16x256xf32> -> vector<16x256xf32>
    %cst_9 = arith.constant dense<0.000000e+00> : vector<16x128xf32>
    %7 = tpu.matmul %6, %1, %cst_9 {dimension_numbers = #tpu.dot_dimension_numbers<[1], [0], [0], [1], [0, 0, 1, 1], [], []>} : vector<16x256xf32>, vector<256x128xf32>, vector<16x128xf32> -> vector<16x128xf32>
    %cst_10 = arith.constant dense<0.000000e+00> : vector<16x256xf32>
    %8 = tpu.matmul %0, %5, %cst_10 {dimension_numbers = #tpu.dot_dimension_numbers<[1], [0], [0], [1], [0, 0, 1, 1], [], []>} : vector<16x32xf32>, vector<32x256xf32>, vector<16x256xf32> -> vector<16x256xf32>
    %cst_11 = arith.constant dense<0.000000e+00> : vector<16x128xf32>
    %9 = tpu.matmul %8, %1, %cst_11 {dimension_numbers = #tpu.dot_dimension_numbers<[1], [0], [0], [1], [0, 0, 1, 1], [], []>} : vector<16x256xf32>, vector<256x128xf32>, vector<16x128xf32> -> vector<16x128xf32>
    %10 = arith.mulf %3, %3 : vector<32x256xf32>
    %cst_12 = arith.constant dense<0.000000e+00> : vector<16x256xf32>
    %11 = tpu.matmul %0, %10, %cst_12 {dimension_numbers = #tpu.dot_dimension_numbers<[1], [0], [0], [1], [0, 0, 1, 1], [], []>} : vector<16x32xf32>, vector<32x256xf32>, vector<16x256xf32> -> vector<16x256xf32>
    %cst_13 = arith.constant dense<0.000000e+00> : vector<16x128xf32>
    %12 = tpu.matmul %11, %1, %cst_13 {dimension_numbers = #tpu.dot_dimension_numbers<[1], [0], [0], [1], [0, 0, 1, 1], [], []>} : vector<16x256xf32>, vector<256x128xf32>, vector<16x128xf32> -> vector<16x128xf32>
    %13 = arith.mulf %5, %5 : vector<32x256xf32>
    %cst_14 = arith.constant dense<0.000000e+00> : vector<16x256xf32>
    %14 = tpu.matmul %0, %13, %cst_14 {dimension_numbers = #tpu.dot_dimension_numbers<[1], [0], [0], [1], [0, 0, 1, 1], [], []>} : vector<16x32xf32>, vector<32x256xf32>, vector<16x256xf32> -> vector<16x256xf32>
    %cst_15 = arith.constant dense<0.000000e+00> : vector<16x128xf32>
    %15 = tpu.matmul %14, %1, %cst_15 {dimension_numbers = #tpu.dot_dimension_numbers<[1], [0], [0], [1], [0, 0, 1, 1], [], []>} : vector<16x256xf32>, vector<256x128xf32>, vector<16x128xf32> -> vector<16x128xf32>
    %16 = arith.mulf %3, %5 : vector<32x256xf32>
    %cst_16 = arith.constant dense<0.000000e+00> : vector<16x256xf32>
    %17 = tpu.matmul %0, %16, %cst_16 {dimension_numbers = #tpu.dot_dimension_numbers<[1], [0], [0], [1], [0, 0, 1, 1], [], []>} : vector<16x32xf32>, vector<32x256xf32>, vector<16x256xf32> -> vector<16x256xf32>
    %cst_17 = arith.constant dense<0.000000e+00> : vector<16x128xf32>
    %18 = tpu.matmul %17, %1, %cst_17 {dimension_numbers = #tpu.dot_dimension_numbers<[1], [0], [0], [1], [0, 0, 1, 1], [], []>} : vector<16x256xf32>, vector<256x128xf32>, vector<16x128xf32> -> vector<16x128xf32>
    %19 = arith.mulf %7, %7 : vector<16x128xf32>
    %20 = arith.mulf %9, %9 : vector<16x128xf32>
    %21 = arith.mulf %7, %9 : vector<16x128xf32>
    %22 = arith.subf %12, %19 : vector<16x128xf32>
    %23 = arith.subf %15, %20 : vector<16x128xf32>
    %24 = arith.subf %18, %21 : vector<16x128xf32>
    %cst_18 = arith.constant 2.000000e+00 : f32
    %25 = vector.broadcast %cst_18 : f32 to vector<16x128xf32>
    %26 = arith.mulf %25, %21 : vector<16x128xf32>
    %cst_19 = arith.constant 9.99999974E-5 : f32
    %27 = vector.broadcast %cst_19 : f32 to vector<16x128xf32>
    %28 = arith.addf %26, %27 : vector<16x128xf32>
    %cst_20 = arith.constant 2.000000e+00 : f32
    %29 = vector.broadcast %cst_20 : f32 to vector<16x128xf32>
    %30 = arith.mulf %29, %24 : vector<16x128xf32>
    %cst_21 = arith.constant 8.99999984E-4 : f32
    %31 = vector.broadcast %cst_21 : f32 to vector<16x128xf32>
    %32 = arith.addf %30, %31 : vector<16x128xf32>
    %33 = arith.mulf %28, %32 : vector<16x128xf32>
    %34 = arith.addf %19, %20 : vector<16x128xf32>
    %cst_22 = arith.constant 9.99999974E-5 : f32
    %35 = vector.broadcast %cst_22 : f32 to vector<16x128xf32>
    %36 = arith.addf %34, %35 : vector<16x128xf32>
    %37 = arith.addf %22, %23 : vector<16x128xf32>
    %cst_23 = arith.constant 8.99999984E-4 : f32
    %38 = vector.broadcast %cst_23 : f32 to vector<16x128xf32>
    %39 = arith.addf %37, %38 : vector<16x128xf32>
    %40 = arith.mulf %36, %39 : vector<16x128xf32>
    %41 = tpu.reciprocal %40 : vector<16x128xf32> -> vector<16x128xf32>
    %42 = arith.mulf %33, %41 : vector<16x128xf32>
    %43 = vector.shape_cast %42 : vector<16x128xf32> to vector<1x16x128xf32>
    %cst_24 = arith.constant dense<0.000000e+00> : vector<1xf32>
    %44 = vector.multi_reduction <add>, %43, %cst_24 [1, 2] : vector<1x16x128xf32> to vector<1xf32>
    %45 = vector.shape_cast %44 : vector<1xf32> to vector<1x1x1xf32>
    %46 = vector.extract %45[0, 0, 0] : f32 from vector<1x1x1xf32>
    %47 = vector.broadcast %46 : f32 to vector<8x128xf32>
    %c0_25 = arith.constant 0 : index
    %c0_26 = arith.constant 0 : index
    %c0_27 = arith.constant 0 : index
    %48 = vector.load %arg5[%c0_25, %c0_26, %c0_27] : memref<1x8x128xf32, #tpu.memory_space<vmem>>, vector<1x8x128xf32>
    %49 = vector.shape_cast %48 : vector<1x8x128xf32> to vector<8x128xf32>
    %50 = vector.shape_cast %47 : vector<8x128xf32> to vector<1x8x128xf32>
    tpu.vector_store %arg5[%c0_25, %c0_26, %c0_27], %50 {strides = array<i32>} : memref<1x8x128xf32, #tpu.memory_space<vmem>>, vector<1x8x128xf32>,
    return
  }
  func.func @transform_0(%arg0: i32) -> (i32, i32) {
    %c0_i32 = arith.constant 0 : i32
    %c0_i32_0 = arith.constant 0 : i32
    %c0_i32_1 = arith.constant 0 : i32
    return %c0_i32, %c0_i32_0 : i32, i32
  }
  func.func @transform_1(%arg0: i32) -> (i32, i32) {
    %c0_i32 = arith.constant 0 : i32
    %c0_i32_0 = arith.constant 0 : i32
    %c0_i32_1 = arith.constant 0 : i32
    return %c0_i32, %c0_i32_0 : i32, i32
  }
  func.func @transform_2(%arg0: i32) -> (i32, i32, i32) {
    %c0_i32 = arith.constant 0 : i32
    %c0_i32_0 = arith.constant 0 : i32
    %c0_i32_1 = arith.constant 0 : i32
    return %arg0, %c0_i32, %c0_i32_0 : i32, i32, i32
  }
  func.func @transform_3(%arg0: i32) -> (i32, i32, i32) {
    %c0_i32 = arith.constant 0 : i32
    %c0_i32_0 = arith.constant 0 : i32
    %c0_i32_1 = arith.constant 0 : i32
    return %arg0, %c0_i32, %c0_i32_0 : i32, i32, i32
  }
  func.func @transform_4(%arg0: i32) -> (i32, i32, i32) {
    %c0_i32 = arith.constant 0 : i32
    %c0_i32_0 = arith.constant 0 : i32
    %c0_i32_1 = arith.constant 0 : i32
    return %arg0, %c0_i32, %c0_i32_0 : i32, i32, i32
  }
}

</mosaic_0001>

<bundles_post_ra>
// kernel: tpu_custom_call.1
= control target key start
LH: loop header
LB: loop body
LE: loop exit
PB: predicated region body
PF: predicated region fallthrough
CT: control target
= control target key end

     0   :  { %9 = vsyncpa [#allocation3], 0  ;;  %s1317_s0 = inlined_call_operand.hbm [shape: f32[16,32], index: 0, kind: input, shape index: {}]   ;;  %s1318_s1 = inlined_call_operand.hbm [shape: f32[256,128], index: 1, kind: input, shape index: {}]   ;;  %s1319_s2 = inlined_call_operand.hbm [shape: f32[1,32,256], index: 2, kind: input, shape index: {}]   ;;  %s1320_s3 = inlined_call_operand.hbm [shape: f32[1,32,256], index: 3, kind: input, shape index: {}]   ;;  %s1321_s4 = inlined_call_operand.hbm [shape: f32[1,8,128], index: 4, kind: output, shape index: {}]  }
   0x1   :  { %10 = vsyncpa [#allocation6], 0 }
   0x2   :  { %11 = vsyncpa [#allocation9], 0 }
   0x3   :  { %12 = vsyncpa [#allocation4], 0  ;;  %s30_s17 = sshll.u32 %s1318_s1, 4  ;;  %s878_s18 = smov [#allocation5]   ;;  %s31_s17 = int_to_ptr.hbm [resolvable:$true] %s30_s17 }
   0x4   :  { %s32_s19 = sshll.u32 %s878_s18, 4  ;;  %s17_s22 = sshll.u32 %s1317_s0, 4  ;;  %s33_s19 = int_to_ptr.vmem [resolvable:$true] %s32_s19  ;;  %s18_s22 = int_to_ptr.hbm [resolvable:$true] %s17_s22 }
   0x5   :  { %s879_s23 = smov 128   ;;  %s880_s24 = smov 8  }
   0x6   :  { %38 = dma.hbm_to_vmem [thread:$0]  %s31_s17, 4096, %s33_s19, [#allocation6], %s879_s23, %s879_s23, %s880_s24  }
   0x7   :  { %s881_s25 = smov [#allocation2]   ;;  %s43_s29 = sshll.u32 %s1319_s2, 4  ;;  %s44_s29 = int_to_ptr.hbm [resolvable:$true] %s43_s29 }
   0x8   :  { %s19_s26 = sshll.u32 %s881_s25, 4  ;;  %s882_s1 = smov [#allocation7]   ;;  %s20_s26 = int_to_ptr.vmem [resolvable:$true] %s19_s26 }
   0x9   :  { %25 = dma.hbm_to_vmem [thread:$0]  %s18_s22, 256, %s20_s26, [#allocation3], %s879_s23, %s879_s23, %s880_s24  }
   0xa   :  { %s45_s30 = sshll.u32 %s882_s1, 4  ;;  %s56_s0 = sshll.u32 %s1320_s3, 4  ;;  %s46_s30 = int_to_ptr.vmem [resolvable:$true] %s45_s30  ;;  %s57_s0 = int_to_ptr.hbm [resolvable:$true] %s56_s0 }
   0xb   :  { %s883_s7 = smov 256   ;;  %s884_s8 = smov 16  }
   0xc   :  { %51 = dma.hbm_to_vmem [thread:$0]  %s44_s29, 1024, %s46_s30, [#allocation6], %s883_s7, %s883_s7, %s884_s8  }
   0xd   :  { %s885_s9 = smov [#allocation8]  }
   0xe   :  { %s58_s10 = sshll.u32 %s885_s9, 4  ;;  %s59_s10 = int_to_ptr.vmem [resolvable:$true] %s58_s10 }
   0xf   :  { %64 = dma.hbm_to_vmem [thread:$0]  %s57_s0, 1024, %s59_s10, [#allocation9], %s883_s7, %s883_s7, %s884_s8  }
  0x10   :  { %870 = dma.done.wait [#allocation3], 256  }
  0x11   :  { %871 = vsyncadd [#allocation3], 4294967040 }
  0x12   :  { %872 = dma.done.wait [#allocation6], 5120  }
  0x13   :  { %873 = vsyncadd [#allocation6], 4294962176 }
  0x14   :  { %874 = dma.done.wait [#allocation9], 1024  }
  0x15   :  { %875 = vsyncadd [#allocation9], 4294966272  ;;  %v924_v0 = vld [vmem:[#allocation7 + $0x30] sm:$0xff]  ;;  %v926_v1 = vld [vmem:[#allocation7 + $0x38] sm:$0xff]  ;;  %vm131_vm0 = vcmask 261120   ;;  %s886_s2 = smov [#allocation10]  }
  0x16   :  { %v928_v2 = vld [vmem:[#allocation7 + $0x20] sm:$0xff]  ;;  %150 = vmatpush.msra.mxu0 %v924_v0  ;;  %173 = vmatpush.msra.mxu1 %v926_v1  ;;  %v932_v3 = vld [vmem:[#allocation7 + $0x28] sm:$0xff]  ;;  %v934_v4 = vld [vmem:[#allocation7 + $0x10] sm:$0xff]  ;;  %v328_v50 = vmul.f32 %v924_v0, %v924_v0  ;;  %v329_v51 = vmul.f32 %v926_v1, %v926_v1  ;;  %s701_s3 = sshll.u32 %s886_s2, 4  ;;  %s703_s13 = sshll.u32 %s1321_s4, 4  ;;  %s702_s3 = int_to_ptr.vmem [resolvable:$true] %s701_s3  ;;  %s704_s13 = int_to_ptr.hbm [resolvable:$true] %s703_s13 }
  0x17   :  { %v936_v5 = vld [vmem:[#allocation7 + $0x18] sm:$0xff]  ;;  %v940_v6 = vld [vmem:[#allocation8 + $0x30] sm:$0xff]  ;;  %v944_v8 = vld [vmem:[#allocation7] sm:$0xff]  ;;  %v326_v54 = vmul.f32 %v928_v2, %v928_v2  ;;  %v327_v55 = vmul.f32 %v932_v3, %v932_v3  ;;  %v324_v56 = vmul.f32 %v934_v4, %v934_v4 }
  0x18   :  { %151 = vmatpush.msra.mxu0 %v928_v2  ;;  %174 = vmatpush.msra.mxu1 %v932_v3  ;;  %v942_v7 = vld [vmem:[#allocation8 + $0x38] sm:$0xff]  ;;  %v946_v9 = vld [vmem:[#allocation7 + $0x8] sm:$0xff]  ;;  %v950_v10 = vmul.f32 %v940_v6, %v924_v0  ;;  %v958_v12 = vld [vmem:[#allocation2] sm:$0xff]  ;;  %v325_v57 = vmul.f32 %v936_v5, %v936_v5  ;;  %v322_v58 = vmul.f32 %v944_v8, %v944_v8 }
  0x19   :  { %v954_v11 = vmul.f32 %v942_v7, %v926_v1  ;;  %v962_v13 = vld [vmem:[#allocation5 + $0x78] sm:$0xff]  ;;  %v970_v15 = vld [vmem:[#allocation8 + $0x20] sm:$0xff]  ;;  %v972_v16 = vld [vmem:[#allocation8 + $0x28] sm:$0xff]  ;;  %v323_v59 = vmul.f32 %v946_v9, %v946_v9  ;;  %v428_v0 = vmul.f32 %v940_v6, %v940_v6  ;;  %v429_v1 = vmul.f32 %v942_v7, %v942_v7 }
  0x1a   :  { %152 = vmatpush.msra.mxu0 %v934_v4  ;;  %175 = vmatpush.msra.mxu1 %v936_v5  ;;  %v964_v14 = vld [vmem:[#allocation5 + $0xf8] sm:$0xff]  ;;  %v976_v17 = vld [vmem:[#allocation5 + $0x70] sm:$0xff]  ;;  %v988_v21 = vld [vmem:[#allocation5 + $0x68] sm:$0xff] }
  0x1b   :  { %v978_v18 = vld [vmem:[#allocation5 + $0xf0] sm:$0xff]  ;;  %v982_v20 = vld [vmem:[#allocation8 + $0x18] sm:$0xff]  ;;  %184 = vmatpush.msra.mxu2 %v962_v13  ;;  %207 = vmatpush.msra.mxu3 %v964_v14  ;;  %v990_v22 = vld [vmem:[#allocation5 + $0xe8] sm:$0xff] }
  0x1c   :  { %153 = vmatpush.msra.mxu0 %v944_v8  ;;  %176 = vmatpush.msra.mxu1 %v946_v9  ;;  %v980_v19 = vld [vmem:[#allocation8 + $0x10] sm:$0xff]  ;;  %v992_v23 = vld [vmem:[#allocation8] sm:$0xff]  ;;  %v994_v24 = vld [vmem:[#allocation8 + $0x8] sm:$0xff] }
  0x1d   :  { %715 = vmatmul.msk.f32.vlgmr.msra.gmra.mxu0 %vm131_vm0, %v958_v12  ;;  %717 = vmatmul.msk.f32.vlgmr.msra.gmra.mxu1 %vm131_vm0, %v958_v12  ;;  %v998_v25 = vld [vmem:[#allocation2 + $0x8] sm:$0xff]  ;;  %v1004_v26 = vld [vmem:[#allocation5 + $0x60] sm:$0xff]  ;;  %v1020_v30 = vld [vmem:[#allocation5 + $0x50] sm:$0xff] }
  0x1e   :  { %242 = vmatpush.msrb.mxu0 %v940_v6  ;;  %265 = vmatpush.msrb.mxu1 %v942_v7  ;;  %v1006_v27 = vld [vmem:[#allocation5 + $0xe0] sm:$0xff]  ;;  %v1014_v28 = vld [vmem:[#allocation5 + $0x58] sm:$0xff]  ;;  %v1022_v31 = vld [vmem:[#allocation5 + $0xd0] sm:$0xff]  ;;  %v425_v6 = vmul.f32 %v982_v20, %v982_v20  ;;  %v422_v7 = vmul.f32 %v992_v23, %v992_v23 }
  0x1f   :  { %185 = vmatpush.msra.mxu2 %v976_v17  ;;  %208 = vmatpush.msra.mxu3 %v978_v18  ;;  %v1016_v29 = vld [vmem:[#allocation5 + $0xd8] sm:$0xff]  ;;  %v1028_v32 = vld [vmem:[#allocation5 + $0x48] sm:$0xff]  ;;  %v1036_v34 = vld [vmem:[#allocation5 + $0x40] sm:$0xff] }
  0x20   :  { %243 = vmatpush.msrb.mxu0 %v970_v15  ;;  %266 = vmatpush.msrb.mxu1 %v972_v16  ;;  %v1030_v33 = vld [vmem:[#allocation5 + $0xc8] sm:$0xff]  ;;  %v1038_v35 = vld [vmem:[#allocation5 + $0xc0] sm:$0xff]  ;;  %v1048_v36 = vld [vmem:[#allocation5 + $0x38] sm:$0xff] }
  0x21   :  { %186 = vmatpush.msra.mxu2 %v988_v21  ;;  %209 = vmatpush.msra.mxu3 %v990_v22  ;;  %v1050_v37 = vld [vmem:[#allocation5 + $0xb8] sm:$0xff]  ;;  %v1054_v38 = vld [vmem:[#allocation5 + $0x30] sm:$0xff]  ;;  %v1062_v40 = vld [vmem:[#allocation5 + $0x28] sm:$0xff] }
  0x22   :  { %244 = vmatpush.msrb.mxu0 %v980_v19  ;;  %267 = vmatpush.msrb.mxu1 %v982_v20  ;;  %v1056_v39 = vld [vmem:[#allocation5 + $0xb0] sm:$0xff]  ;;  %v1064_v41 = vld [vmem:[#allocation5 + $0xa8] sm:$0xff]  ;;  %v1070_v42 = vld [vmem:[#allocation5 + $0x20] sm:$0xff] }
  0x23   :  { %187 = vmatpush.msra.mxu2 %v1004_v26  ;;  %210 = vmatpush.msra.mxu3 %v1006_v27  ;;  %v1072_v43 = vld [vmem:[#allocation5 + $0xa0] sm:$0xff]  ;;  %v1082_v44 = vld [vmem:[#allocation5 + $0x18] sm:$0xff]  ;;  %v1088_v46 = vld [vmem:[#allocation5 + $0x10] sm:$0xff] }
  0x24   :  { %245 = vmatpush.msrb.mxu0 %v992_v23  ;;  %268 = vmatpush.msrb.mxu1 %v994_v24  ;;  %v1084_v45 = vld [vmem:[#allocation5 + $0x98] sm:$0xff]  ;;  %v1090_v47 = vld [vmem:[#allocation5 + $0x90] sm:$0xff]  ;;  %v1096_v48 = vld [vmem:[#allocation5 + $0x8] sm:$0xff] }
  0x25   :  { %716 = vmatmul.msk.f32.gmra.mxu0 %vm131_vm0, %v998_v25  ;;  %718 = vmatmul.msk.f32.gmra.mxu1 %vm131_vm0, %v998_v25  ;;  %v1098_v49 = vld [vmem:[#allocation5 + $0x88] sm:$0xff]  ;;  %v1124_v52 = vld [vmem:[#allocation5] sm:$0xff] }
  0x26   :  { %276 = vmatpush.msra.mxu0 %v962_v13  ;;  %299 = vmatpush.msra.mxu1 %v964_v14  ;;  %v1126_v53 = vld [vmem:[#allocation5 + $0x80] sm:$0xff] }
  0x27   :  { %188 = vmatpush.msra.mxu2 %v1014_v28  ;;  %211 = vmatpush.msra.mxu3 %v1016_v29 }
  0x28   :  { %277 = vmatpush.msra.mxu0 %v976_v17  ;;  %300 = vmatpush.msra.mxu1 %v978_v18 }
  0x29   :  { %189 = vmatpush.msra.mxu2 %v1020_v30  ;;  %212 = vmatpush.msra.mxu3 %v1022_v31 }
  0x2a   :  { %278 = vmatpush.msra.mxu0 %v988_v21  ;;  %301 = vmatpush.msra.mxu1 %v990_v22 }
  0x2b   :  { %190 = vmatpush.msra.mxu2 %v1028_v32  ;;  %213 = vmatpush.msra.mxu3 %v1030_v33 }
  0x2c   :  { %279 = vmatpush.msra.mxu0 %v1004_v26  ;;  %302 = vmatpush.msra.mxu1 %v1006_v27 }
  0x2d   :  { %719 = vmatmul.msk.f32.vlgmr.msrb.gmra.mxu0 %vm131_vm0, %v958_v12  ;;  %721 = vmatmul.msk.f32.vlgmr.msrb.gmra.mxu1 %vm131_vm0, %v958_v12 }
  0x2e   :  { %191 = vmatpush.msra.mxu2 %v1036_v34  ;;  %214 = vmatpush.msra.mxu3 %v1038_v35 }
  0x2f   :  { %280 = vmatpush.msra.mxu0 %v1014_v28  ;;  %303 = vmatpush.msra.mxu1 %v1016_v29 }
  0x30   :  { %192 = vmatpush.msra.mxu2 %v1048_v36  ;;  %215 = vmatpush.msra.mxu3 %v1050_v37 }
  0x31   :  { %281 = vmatpush.msra.mxu0 %v1020_v30  ;;  %304 = vmatpush.msra.mxu1 %v1022_v31 }
  0x32   :  { %193 = vmatpush.msra.mxu2 %v1054_v38  ;;  %216 = vmatpush.msra.mxu3 %v1056_v39 }
  0x33   :  { %282 = vmatpush.msra.mxu0 %v1028_v32  ;;  %305 = vmatpush.msra.mxu1 %v1030_v33 }
  0x34   :  { %194 = vmatpush.msra.mxu2 %v1062_v40  ;;  %217 = vmatpush.msra.mxu3 %v1064_v41 }
  0x35   :  { %720 = vmatmul.msk.f32.gmra.mxu0 %vm131_vm0, %v998_v25  ;;  %722 = vmatmul.msk.f32.gmra.mxu1 %vm131_vm0, %v998_v25 }
  0x36   :  { %195 = vmatpush.msra.mxu2 %v1070_v42  ;;  %218 = vmatpush.msra.mxu3 %v1072_v43 }
  0x37   :  { %283 = vmatpush.msra.mxu0 %v1036_v34  ;;  %306 = vmatpush.msra.mxu1 %v1038_v35 }
  0x38   :  { %196 = vmatpush.msra.mxu2 %v1082_v44  ;;  %219 = vmatpush.msra.mxu3 %v1084_v45 }
  0x39   :  { %284 = vmatpush.msra.mxu0 %v1048_v36  ;;  %307 = vmatpush.msra.mxu1 %v1050_v37 }
  0x3a   :  { %197 = vmatpush.msra.mxu2 %v1088_v46  ;;  %220 = vmatpush.msra.mxu3 %v1090_v47 }
  0x3b   :  { %285 = vmatpush.msra.mxu0 %v1054_v38  ;;  %308 = vmatpush.msra.mxu1 %v1056_v39 }
  0x3c   :  { %198 = vmatpush.msra.mxu2 %v1096_v48  ;;  %221 = vmatpush.msra.mxu3 %v1098_v49 }
  0x3d   :  { %286 = vmatpush.msra.mxu0 %v1062_v40  ;;  %309 = vmatpush.msra.mxu1 %v1064_v41 }
  0x3e   :  { %199 = vmatpush.msra.mxu2 %v1124_v52  ;;  %222 = vmatpush.msra.mxu3 %v1126_v53 }
  0x3f   :  { %287 = vmatpush.msra.mxu0 %v1070_v42  ;;  %310 = vmatpush.msra.mxu1 %v1072_v43 }
  0x40   :  { %376 = vmatpush.msrb.mxu2 %v962_v13  ;;  %399 = vmatpush.msrb.mxu3 %v964_v14 }
  0x41   :  { %288 = vmatpush.msra.mxu0 %v1082_v44  ;;  %311 = vmatpush.msra.mxu1 %v1084_v45 }
  0x42   :  { %377 = vmatpush.msrb.mxu2 %v976_v17  ;;  %400 = vmatpush.msrb.mxu3 %v978_v18 }
  0x43   :  { %289 = vmatpush.msra.mxu0 %v1088_v46  ;;  %312 = vmatpush.msra.mxu1 %v1090_v47 }
  0x44   :  { %378 = vmatpush.msrb.mxu2 %v988_v21  ;;  %401 = vmatpush.msrb.mxu3 %v990_v22 }
  0x45   :  { %290 = vmatpush.msra.mxu0 %v1096_v48  ;;  %313 = vmatpush.msra.mxu1 %v1098_v49 }
  0x46   :  { %379 = vmatpush.msrb.mxu2 %v1004_v26  ;;  %402 = vmatpush.msrb.mxu3 %v1006_v27 }
  0x47   :  { %291 = vmatpush.msra.mxu0 %v1124_v52  ;;  %314 = vmatpush.msra.mxu1 %v1126_v53 }
  0x48   :  { %380 = vmatpush.msrb.mxu2 %v1014_v28  ;;  %403 = vmatpush.msrb.mxu3 %v1016_v29 }
  0x49   :  { %342 = vmatpush.msrb.mxu0 %v328_v50  ;;  %365 = vmatpush.msrb.mxu1 %v329_v51 }
  0x4a   :  { %381 = vmatpush.msrb.mxu2 %v1020_v30  ;;  %404 = vmatpush.msrb.mxu3 %v1022_v31 }
  0x4b   :  { %343 = vmatpush.msrb.mxu0 %v326_v54  ;;  %366 = vmatpush.msrb.mxu1 %v327_v55  ;;  %v426_v54 = vmul.f32 %v970_v15, %v970_v15  ;;  %v423_v55 = vmul.f32 %v994_v24, %v994_v24 }
  0x4c   :  { %382 = vmatpush.msrb.mxu2 %v1028_v32  ;;  %405 = vmatpush.msrb.mxu3 %v1030_v33 }
  0x4d   :  { %344 = vmatpush.msrb.mxu0 %v324_v56  ;;  %367 = vmatpush.msrb.mxu1 %v325_v57 }
  0x4e   :  { %383 = vmatpush.msrb.mxu2 %v1036_v34  ;;  %406 = vmatpush.msrb.mxu3 %v1038_v35 }
  0x4f   :  { %345 = vmatpush.msrb.mxu0 %v322_v58  ;;  %368 = vmatpush.msrb.mxu1 %v323_v59  ;;  %v526_v58 = vmul.f32 %v970_v15, %v928_v2  ;;  %v527_v59 = vmul.f32 %v972_v16, %v932_v3  ;;  %v523_v2 = vmul.f32 %v994_v24, %v946_v9 }
  0x50   :  { %384 = vmatpush.msrb.mxu2 %v1048_v36  ;;  %407 = vmatpush.msrb.mxu3 %v1050_v37 }
  0x52   :  { %385 = vmatpush.msrb.mxu2 %v1054_v38  ;;  %408 = vmatpush.msrb.mxu3 %v1056_v39 }
  0x54   :  { %386 = vmatpush.msrb.mxu2 %v1062_v40  ;;  %409 = vmatpush.msrb.mxu3 %v1064_v41 }
  0x56   :  { %387 = vmatpush.msrb.mxu2 %v1070_v42  ;;  %410 = vmatpush.msrb.mxu3 %v1072_v43 }
  0x58   :  { %388 = vmatpush.msrb.mxu2 %v1082_v44  ;;  %411 = vmatpush.msrb.mxu3 %v1084_v45 }
  0x5a   :  { %389 = vmatpush.msrb.mxu2 %v1088_v46  ;;  %412 = vmatpush.msrb.mxu3 %v1090_v47 }
  0x5c   :  { %390 = vmatpush.msrb.mxu2 %v1096_v48  ;;  %413 = vmatpush.msrb.mxu3 %v1098_v49 }
  0x5e   :  { %391 = vmatpush.msrb.mxu2 %v1124_v52  ;;  %414 = vmatpush.msrb.mxu3 %v1126_v53 }
  0x9a   :  { %v155_v60 = vpop.f32.mrf.mxu0  ;;  %v178_v61 = vpop.f32.mrf.mxu1 }
  0x9b   :  { %200 = vmatmul.f32.vlgmr.msra.gmra.mxu2 %v155_v60  ;;  %223 = vmatmul.f32.vlgmr.msra.gmra.mxu3 %v178_v61 }
  0x9c   :  { %542 = vmatpush.msra.mxu2 %v950_v10  ;;  %565 = vmatpush.msra.mxu3 %v954_v11  ;;  %v427_v10 = vmul.f32 %v972_v16, %v972_v16  ;;  %v424_v11 = vmul.f32 %v980_v19, %v980_v19 }
  0x9e   :  { %543 = vmatpush.msra.mxu2 %v526_v58  ;;  %566 = vmatpush.msra.mxu3 %v527_v59 }
  0xa2   :  { %v158_v62 = vpop.f32.mrf.mxu0  ;;  %v181_v63 = vpop.f32.mrf.mxu1 }
  0xa3   :  { %203 = vmatmul.f32.gmra.mxu2 %v158_v62  ;;  %226 = vmatmul.f32.gmra.mxu3 %v181_v63  ;;  %v524_v63 = vmul.f32 %v980_v19, %v934_v4 }
  0xa5   :  { %544 = vmatpush.msra.mxu2 %v524_v63 }
  0xaa   :  { %v247_v50 = vpop.f32.mrf.mxu0  ;;  %v270_v51 = vpop.f32.mrf.mxu1 }
  0xab   :  { %292 = vmatmul.f32.vlgmr.msra.gmra.mxu0 %v247_v50  ;;  %315 = vmatmul.f32.vlgmr.msra.gmra.mxu1 %v270_v51 }
  0xac   :  { %442 = vmatpush.msra.mxu0 %v428_v0  ;;  %465 = vmatpush.msra.mxu1 %v429_v1  ;;  %v525_v0 = vmul.f32 %v982_v20, %v936_v5  ;;  %v522_v1 = vmul.f32 %v992_v23, %v944_v8 }
  0xae   :  { %443 = vmatpush.msra.mxu0 %v426_v54  ;;  %466 = vmatpush.msra.mxu1 %v427_v10 }
  0xaf   :  { %567 = vmatpush.msra.mxu3 %v525_v0  ;;  %545 = vmatpush.msra.mxu2 %v522_v1 }
  0xb0   :  { %444 = vmatpush.msra.mxu0 %v424_v11  ;;  %467 = vmatpush.msra.mxu1 %v425_v6 }
  0xb1   :  { %568 = vmatpush.msra.mxu3 %v523_v2 }
  0xb2   :  { %v250_v56 = vpop.f32.mrf.mxu0  ;;  %v273_v57 = vpop.f32.mrf.mxu1  ;;  %445 = vmatpush.msra.mxu0 %v422_v7  ;;  %468 = vmatpush.msra.mxu1 %v423_v55 }
  0xb3   :  { %295 = vmatmul.f32.gmra.mxu0 %v250_v56  ;;  %318 = vmatmul.f32.gmra.mxu1 %v273_v57 }
  0xbb   :  { %723 = vmatmul.msk.f32.vlgmr.msrb.gmra.mxu0 %vm131_vm0, %v958_v12  ;;  %725 = vmatmul.msk.f32.vlgmr.msrb.gmra.mxu1 %vm131_vm0, %v958_v12 }
  0xbc   :  { %476 = vmatpush.msrb.mxu0 %v962_v13  ;;  %499 = vmatpush.msrb.mxu1 %v964_v14 }
  0xbe   :  { %477 = vmatpush.msrb.mxu0 %v976_v17  ;;  %500 = vmatpush.msrb.mxu1 %v978_v18 }
  0xc0   :  { %478 = vmatpush.msrb.mxu0 %v988_v21  ;;  %501 = vmatpush.msrb.mxu1 %v990_v22 }
  0xc2   :  { %479 = vmatpush.msrb.mxu0 %v1004_v26  ;;  %502 = vmatpush.msrb.mxu1 %v1006_v27 }
  0xc3   :  { %724 = vmatmul.msk.f32.gmra.mxu0 %vm131_vm0, %v998_v25  ;;  %726 = vmatmul.msk.f32.gmra.mxu1 %vm131_vm0, %v998_v25 }
  0xc4   :  { %480 = vmatpush.msrb.mxu0 %v1014_v28  ;;  %503 = vmatpush.msrb.mxu1 %v1016_v29 }
  0xc6   :  { %481 = vmatpush.msrb.mxu0 %v1020_v30  ;;  %504 = vmatpush.msrb.mxu1 %v1022_v31 }
  0xc8   :  { %482 = vmatpush.msrb.mxu0 %v1028_v32  ;;  %505 = vmatpush.msrb.mxu1 %v1030_v33 }
  0xca   :  { %483 = vmatpush.msrb.mxu0 %v1036_v34  ;;  %506 = vmatpush.msrb.mxu1 %v1038_v35 }
  0xcb   :  { %727 = vmatmul.msk.f32.vlgmr.msra.gmra.mxu0 %vm131_vm0, %v958_v12  ;;  %729 = vmatmul.msk.f32.vlgmr.msra.gmra.mxu1 %vm131_vm0, %v958_v12 }
  0xcc   :  { %484 = vmatpush.msrb.mxu0 %v1048_v36  ;;  %507 = vmatpush.msrb.mxu1 %v1050_v37 }
  0xce   :  { %485 = vmatpush.msrb.mxu0 %v1054_v38  ;;  %508 = vmatpush.msrb.mxu1 %v1056_v39 }
  0xd0   :  { %486 = vmatpush.msrb.mxu0 %v1062_v40  ;;  %509 = vmatpush.msrb.mxu1 %v1064_v41 }
  0xd2   :  { %487 = vmatpush.msrb.mxu0 %v1070_v42  ;;  %510 = vmatpush.msrb.mxu1 %v1072_v43 }
  0xd3   :  { %728 = vmatmul.msk.f32.gmra.mxu0 %vm131_vm0, %v998_v25  ;;  %730 = vmatmul.msk.f32.gmra.mxu1 %vm131_vm0, %v998_v25 }
  0xd4   :  { %488 = vmatpush.msrb.mxu0 %v1082_v44  ;;  %511 = vmatpush.msrb.mxu1 %v1084_v45 }
  0xd6   :  { %489 = vmatpush.msrb.mxu0 %v1088_v46  ;;  %512 = vmatpush.msrb.mxu1 %v1090_v47 }
  0xd8   :  { %490 = vmatpush.msrb.mxu0 %v1096_v48  ;;  %513 = vmatpush.msrb.mxu1 %v1098_v49 }
  0xda   :  { %491 = vmatpush.msrb.mxu0 %v1124_v52  ;;  %514 = vmatpush.msrb.mxu1 %v1126_v53 }
 0x11e   :  { %v201_v60 = vpop.f32.mrf.mxu2  ;;  %v224_v61 = vpop.f32.mrf.mxu3 }
 0x11f   :  { %v225_v62 = vadd.f32 %v224_v61, %v201_v60 }
 0x121   :  { %v1254_v50 = vmul.f32 %v225_v62, %v225_v62 }
 0x128   :  { %v293_v3 = vpop.f32.mrf.mxu0  ;;  %v316_v15 = vpop.f32.mrf.mxu1 }
 0x129   :  { %v317_v16 = vadd.f32 %v316_v15, %v293_v3 }
 0x12b   :  { %v1256_v51 = vmul.f32 %v317_v16, %v317_v16  ;;  %v1258_v4 = vmul.f32 %v317_v16, %v225_v62 }
 0x12d   :  { %v1262_v5 = vadd.f32 %v1256_v51, %v1254_v50  ;;  %v634_v0 = vmul.f32 2.0, %v1258_v4 }
 0x130   :  { %v296_v8 = vpop.f32.mrf.mxu0  ;;  %v319_v19 = vpop.f32.mrf.mxu1 }
 0x131   :  { %v1264_v9 = vadd.f32 %v319_v19, %v296_v8 }
 0x138   :  { %v347_v20 = vpop.f32.mrf.mxu0  ;;  %v370_v23 = vpop.f32.mrf.mxu1 }
 0x139   :  { %392 = vmatmul.f32.vlgmr.msrb.gmra.mxu2 %v347_v20  ;;  %415 = vmatmul.f32.vlgmr.msrb.gmra.mxu3 %v370_v23 }
 0x13a   :  { %576 = vmatpush.msrb.mxu2 %v962_v13  ;;  %599 = vmatpush.msrb.mxu3 %v964_v14 }
 0x13c   :  { %577 = vmatpush.msrb.mxu2 %v976_v17  ;;  %600 = vmatpush.msrb.mxu3 %v978_v18 }
 0x13e   :  { %578 = vmatpush.msrb.mxu2 %v988_v21  ;;  %601 = vmatpush.msrb.mxu3 %v990_v22  ;;  %v227_v21 = vpop.f32.mrf.mxu3 }
 0x140   :  { %v350_v24 = vpop.f32.mrf.mxu0  ;;  %v373_v54 = vpop.f32.mrf.mxu1  ;;  %579 = vmatpush.msrb.mxu2 %v1004_v26  ;;  %602 = vmatpush.msrb.mxu3 %v1006_v27 }
 0x141   :  { %395 = vmatmul.f32.gmra.mxu2 %v350_v24  ;;  %418 = vmatmul.f32.gmra.mxu3 %v373_v54 }
 0x142   :  { %580 = vmatpush.msrb.mxu2 %v1014_v28  ;;  %603 = vmatpush.msrb.mxu3 %v1016_v29 }
 0x144   :  { %581 = vmatpush.msrb.mxu2 %v1020_v30  ;;  %604 = vmatpush.msrb.mxu3 %v1022_v31 }
 0x146   :  { %582 = vmatpush.msrb.mxu2 %v1028_v32  ;;  %605 = vmatpush.msrb.mxu3 %v1030_v33 }
 0x148   :  { %v447_v13 = vpop.f32.mrf.mxu0  ;;  %v470_v14 = vpop.f32.mrf.mxu1  ;;  %583 = vmatpush.msrb.mxu2 %v1036_v34  ;;  %606 = vmatpush.msrb.mxu3 %v1038_v35 }
 0x149   :  { %492 = vmatmul.f32.vlgmr.msrb.gmra.mxu0 %v447_v13  ;;  %515 = vmatmul.f32.vlgmr.msrb.gmra.mxu1 %v470_v14 }
 0x14a   :  { %731 = vmatmul.msk.f32.vlgmr.msra.gmra.mxu2 %vm131_vm0, %v958_v12  ;;  %733 = vmatmul.msk.f32.vlgmr.msra.gmra.mxu3 %vm131_vm0, %v958_v12  ;;  %v204_v12 = vpop.f32.mrf.mxu2 }
 0x14b   :  { %584 = vmatpush.msrb.mxu2 %v1048_v36  ;;  %607 = vmatpush.msrb.mxu3 %v1050_v37  ;;  %v228_v35 = vadd.f32 %v227_v21, %v204_v12  ;;  %v646_v37 = vadd.f32 0.0001, %v1262_v5  ;;  %v636_v5 = vadd.f32 0.0001, %v634_v0 }
 0x14d   :  { %585 = vmatpush.msrb.mxu2 %v1054_v38  ;;  %608 = vmatpush.msrb.mxu3 %v1056_v39  ;;  %v625_v38 = vmul.f32 %v1264_v9, %v1264_v9 }
 0x14f   :  { %586 = vmatpush.msrb.mxu2 %v1062_v40  ;;  %609 = vmatpush.msrb.mxu3 %v1064_v41 }
 0x150   :  { %v450_v17 = vpop.f32.mrf.mxu0  ;;  %v473_v18 = vpop.f32.mrf.mxu1 }
 0x151   :  { %495 = vmatmul.f32.gmra.mxu0 %v450_v17  ;;  %518 = vmatmul.f32.gmra.mxu1 %v473_v18 }
 0x152   :  { %732 = vmatmul.msk.f32.gmra.mxu2 %vm131_vm0, %v998_v25  ;;  %734 = vmatmul.msk.f32.gmra.mxu3 %vm131_vm0, %v998_v25 }
 0x153   :  { %587 = vmatpush.msrb.mxu2 %v1070_v42  ;;  %610 = vmatpush.msrb.mxu3 %v1072_v43 }
 0x155   :  { %588 = vmatpush.msrb.mxu2 %v1082_v44  ;;  %611 = vmatpush.msrb.mxu3 %v1084_v45  ;;  %v623_v44 = vmul.f32 %v228_v35, %v228_v35 }
 0x157   :  { %589 = vmatpush.msrb.mxu2 %v1088_v46  ;;  %612 = vmatpush.msrb.mxu3 %v1090_v47  ;;  %v645_v47 = vadd.f32 %v625_v38, %v623_v44 }
 0x159   :  { %590 = vmatpush.msrb.mxu2 %v1096_v48  ;;  %613 = vmatpush.msrb.mxu3 %v1098_v49 }
 0x15b   :  { %591 = vmatpush.msrb.mxu2 %v1124_v52  ;;  %614 = vmatpush.msrb.mxu3 %v1126_v53  ;;  %v647_v53 = vadd.f32 0.0001, %v645_v47 }
 0x1bc   :  { %v393_v22 = vpop.f32.mrf.mxu2  ;;  %v416_v25 = vpop.f32.mrf.mxu3 }
 0x1bd   :  { %v417_v26 = vadd.f32 %v416_v25, %v393_v22 }
 0x1bf   :  { %v628_v27 = vsub.f32 %v417_v26, %v1254_v50 }
 0x1c4   :  { %v396_v28 = vpop.f32.mrf.mxu2  ;;  %v419_v29 = vpop.f32.mrf.mxu3 }
 0x1c5   :  { %v420_v30 = vadd.f32 %v419_v29, %v396_v28 }
 0x1c6   :  { %v493_v31 = vpop.f32.mrf.mxu0  ;;  %v516_v32 = vpop.f32.mrf.mxu1 }
 0x1c7   :  { %v517_v33 = vadd.f32 %v516_v32, %v493_v31  ;;  %v629_v48 = vsub.f32 %v420_v30, %v623_v44 }
 0x1c9   :  { %v630_v34 = vsub.f32 %v517_v33, %v1256_v51  ;;  %v627_v51 = vmul.f32 %v1264_v9, %v228_v35 }
 0x1cb   :  { %v648_v36 = vadd.f32 %v630_v34, %v628_v27 }
 0x1cd   :  { %v650_v39 = vadd.f32 0.0009, %v648_v36  ;;  %v547_v40 = vpop.f32.mrf.mxu2  ;;  %v570_v41 = vpop.f32.mrf.mxu3 }
 0x1ce   :  { %592 = vmatmul.f32.vlgmr.msrb.gmra.mxu2 %v547_v40  ;;  %615 = vmatmul.f32.vlgmr.msrb.gmra.mxu3 %v570_v41  ;;  %v496_v42 = vpop.f32.mrf.mxu0  ;;  %v519_v43 = vpop.f32.mrf.mxu1 }
 0x1cf   :  { %v652_v45 = vmul.f32 %v650_v39, %v646_v37  ;;  %v520_v46 = vadd.f32 %v519_v43, %v496_v42 }
 0x1d1   :  { %v631_v49 = vsub.f32 %v520_v46, %v625_v38  ;;  %746 = vrcp.f32 %v652_v45  ;;  %v665_v15 = vand.u32 2147483648, %v652_v45  ;;  %vm659_vm2 = vweird.f32 %v652_v45 }
 0x1d2   :  { %v663_v50 = vand.u32 2147483647, %v652_v45 }
 0x1d3   :  { %v649_v52 = vadd.f32 %v631_v49, %v629_v48  ;;  %v666_v54 = vor.u32 1.1754944e-38, %v665_v15 }
 0x1d4   :  { %vm664_vm4 = vcmp.eq.f32.partialorder %v663_v50, 8.507059e+37 }
 0x1d5   :  { %v651_v10 = vadd.f32 0.0009, %v649_v52  ;;  %v550_v11 = vpop.f32.mrf.mxu2  ;;  %v573_v6 = vpop.f32.mrf.mxu3 }
 0x1d6   :  { %595 = vmatmul.f32.gmra.mxu2 %v550_v11  ;;  %618 = vmatmul.f32.gmra.mxu3 %v573_v6 }
 0x1d7   :  { %v653_v7 = vmul.f32 %v651_v10, %v647_v53  ;;  %v747_v55 = vpop.eup %746 }
 0x1d8   :  { %v655_v56 = vmul.f32 %v747_v55, %v652_v45  ;;  %vm660_vm1 = vweird.f32 %v747_v55 }
 0x1d9   :  { %748 = vrcp.f32 %v653_v7  ;;  %vm661_vm3 = vmor %vm659_vm2, %vm660_vm1  ;;  %v679_v22 = vand.u32 2147483648, %v653_v7  ;;  %vm673_vm6 = vweird.f32 %v653_v7  ;;  %v677_v9 = vand.u32 2147483647, %v653_v7 }
 0x1da   :  { %v656_v57 = vsub.f32 1.0, %v655_v56 }
 0x1db   :  { %v680_v29 = vor.u32 1.1754944e-38, %v679_v22  ;;  %vm678_vm8 = vcmp.eq.f32.partialorder %v677_v9, 8.507059e+37 }
 0x1dc   :  { %v657_v59 = vmul.f32 %v747_v55, %v656_v57 }
 0x1de   :  { %v658_v2 = vadd.f32 %v747_v55, %v657_v59 }
 0x1df   :  { %v749_v58 = vpop.eup %748 }
 0x1e0   :  { %v669_v60 = vmul.f32 %v749_v58, %v653_v7  ;;  %v662_v19 = vsel %vm661_vm3, %v747_v55, %v658_v2  ;;  %vm674_vm5 = vweird.f32 %v749_v58 }
 0x1e1   :  { %v667_v17 = vsel %vm664_vm4, %v666_v54, %v662_v19  ;;  %vm675_vm7 = vmor %vm673_vm6, %vm674_vm5 }
 0x1e2   :  { %v670_v3 = vsub.f32 1.0, %v669_v60 }
 0x1e4   :  { %v671_v20 = vmul.f32 %v749_v58, %v670_v3 }
 0x1e6   :  { %v672_v12 = vadd.f32 %v749_v58, %v671_v20 }
 0x1e8   :  { %v676_v28 = vsel %vm675_vm7, %v749_v58, %v672_v12 }
 0x1e9   :  { %v681_v31 = vsel %vm678_vm8, %v680_v29, %v676_v28 }
 0x251   :  { %v593_v61 = vpop.f32.mrf.mxu2  ;;  %v616_v62 = vpop.f32.mrf.mxu3 }
 0x252   :  { %v617_v63 = vadd.f32 %v616_v62, %v593_v61 }
 0x254   :  { %v632_v1 = vsub.f32 %v617_v63, %v1258_v4  ;;  %v635_v4 = vmul.f32 2.0, %v627_v51 }
 0x256   :  { %v638_v16 = vmul.f32 2.0, %v632_v1  ;;  %v637_v26 = vadd.f32 0.0001, %v635_v4 }
 0x258   :  { %v640_v8 = vadd.f32 0.0009, %v638_v16 }
 0x259   :  { %v596_v23 = vpop.f32.mrf.mxu2  ;;  %v619_v24 = vpop.f32.mrf.mxu3 }
 0x25a   :  { %v620_v13 = vadd.f32 %v619_v24, %v596_v23  ;;  %v642_v14 = vmul.f32 %v640_v8, %v636_v5 }
 0x25c   :  { %v633_v18 = vsub.f32 %v620_v13, %v627_v51  ;;  %v682_v21 = vmul.f32 %v667_v17, %v642_v14 }
 0x25e   :  { %v639_v25 = vmul.f32 2.0, %v633_v18 }
 0x260   :  { %v641_v27 = vadd.f32 0.0009, %v639_v25 }
 0x262   :  { %v643_v30 = vmul.f32 %v641_v27, %v637_v26 }
 0x264   :  { %v683_v32 = vmul.f32 %v681_v31, %v643_v30 }
 0x266   :  { %v684_v33 = vadd.f32 %v683_v32, %v682_v21 }
 0x268   :  { %685 = vadd.xlane.f32.xlu0 %v684_v33 }
 0x2db   :  { %v686_v34 = vpop.xlane.xlu0 %685 }
 0x2dc   :  { %v687_v35 = vrot.slane %v686_v34, 4 }
 0x2de   :  { %v688_v36 = vadd.f32 %v687_v35, %v686_v34 }
 0x2e0   :  { %v689_v37 = vrot.slane %v688_v36, 2 }
 0x2e2   :  { %v690_v38 = vadd.f32 %v689_v37, %v688_v36 }
 0x2e4   :  { %v691_v39 = vrot.slane %v690_v38, 1 }
 0x2e6   :  { %v692_v40 = vadd.f32 %v691_v39, %v690_v38 }
 0x2e8   :  { %735 = vpush %v692_v40 }
 0x319   :  { %s736_s14 = spop %735 }
 0x31a   :  { %v694_v41 = vstv %s736_s14 }
 0x31b   :  { %695 = vst [vmem:[#allocation10] sm:$0xff] %v694_v41 }
 0x31c   :  { %706 = dma.vmem_to_hbm [thread:$0]  %s702_s3, 128, %s704_s13, [#allocation4]  }
 0x31d   :  { %876 = dma.done.wait [#allocation4], 128  }
 0x31e   :  { %877 = vsyncadd [#allocation4], 4294967168 }
 0x31f   :  { %711 = vsyncpa [#allocation3], 1 }
 0x320   :  { %712 = vsyncpa [#allocation6], 1 }
 0x321   :  { %713 = vsyncpa [#allocation9], 1 }
 0x322   :  { %714 = vsyncpa [#allocation4], 1 }

</bundles_post_ra>
